<compile_context>
chip_gen: v5e
topology: v5e:2x2
jax: 0.10.0
libtpu: 0.0.40
codegen_flags: <defaults>
</compile_context>

<pallas_src>
import jax
import jax.numpy as jnp
from jax import lax
from jax.experimental import pallas as pl
from jax.experimental.pallas import tpu as pltpu

BN_EPS = 1e-5
NEG_SLOPE = 0.2

# (Cin, Cout, stride, has_bn, act) for the five conv layers.
LAYER_CFG = [
    (1, 8, 2, False, "leaky"),
    (8, 16, 2, True, "leaky"),
    (16, 32, 2, True, "leaky"),
    (32, 8, 2, True, "leaky"),
    (8, 1, 1, False, "sigmoid"),
]


# ----------------------------------------------------------------------------
# Pallas kernel: the whole discriminator, fused, everything VMEM-resident.
# ----------------------------------------------------------------------------
def _disc_kernel(x_ref, t1_ref, t2_ref, t3_ref, t4_ref, t5_ref,
                 b2_ref, b3_ref, b4_ref, o_ref):
    def leaky(v):
        return jnp.where(v > 0, v, NEG_SLOPE * v)

    def bdot(h_f32, t_ref):
        # bf16 MXU inputs (weights are stored bf16), f32 accumulate; all
        # elementwise activation math stays f32.
        return jnp.dot(h_f32.astype(jnp.bfloat16), t_ref[...],
                       preferred_element_type=jnp.float32)

    h = x_ref[...]                                           # (N, 256) f32
    h = leaky(bdot(h, t1_ref))                               # (N, 512)
    h = leaky(bdot(h, t2_ref) + b2_ref[...])                 # (N, 256)
    h = leaky(bdot(h, t3_ref) + b3_ref[...])                 # (N, 128)
    h = leaky(bdot(h, t4_ref) + b4_ref[...])                 # (N, 8)
    # Final conv (K=8, Nout=1): VPU broadcast-multiply + lane reduce instead
    # of a near-empty MXU push on the critical path.
    logits = jnp.sum(h * t5_ref[...], axis=-1, keepdims=True)  # (N, 1)
    o_ref[...] = jax.nn.sigmoid(logits).astype(o_ref.dtype)


# ----------------------------------------------------------------------------
# One-time weight preprocessing: conv (+ folded BN scale) -> dense matrix.
# ----------------------------------------------------------------------------
def _conv_to_toeplitz(w_hwio, scale, H, W, stride):
    """Lower a 3x3, pad=1, dilation=1 conv (scaled per out-channel) to a dense
    matrix T of shape (H*W*Cin, Ho*Wo*Cout) acting on flattened-NHWC rows."""
    KH, KW, Cin, Cout = w_hwio.shape
    Ho = (H - 1) // stride + 1
    Wo = (W - 1) // stride + 1
    w = (w_hwio * scale[None, None, None, :]).astype(jnp.float32)

    iy = jnp.arange(H)[:, None]              # (H, 1)
    oy = jnp.arange(Ho)[None, :]             # (1, Ho)
    ky = iy - stride * oy + 1                # kernel row hit by (iy, oy)
    ky_ok = (ky >= 0) & (ky < KH)
    ix = jnp.arange(W)[:, None]
    ox = jnp.arange(Wo)[None, :]
    kx = ix - stride * ox + 1
    kx_ok = (kx >= 0) & (kx < KW)

    # gather -> (H, Ho, W, Wo, Cin, Cout), then mask invalid taps (padding)
    w_g = w[jnp.clip(ky, 0, KH - 1)][:, :, jnp.clip(kx, 0, KW - 1)]
    mask = (ky_ok[:, :, None, None] & kx_ok[None, None, :, :])[..., None, None]
    t6 = jnp.where(mask, w_g, 0.0)
    t6 = jnp.transpose(t6, (0, 2, 4, 1, 3, 5))   # (H, W, Cin, Ho, Wo, Cout)
    return t6.reshape(H * W * Cin, Ho * Wo * Cout), Ho, Wo


def fold_params(params, H, W):
    """Build per-layer Toeplitz matrices (BN scale folded into weights, stored
    bf16 for the MXU layers) and spatially-tiled BN biases (f32).
    Input-independent; do once per parameter set."""
    mats, biases = [], []
    h, w = H, W
    for p in params:
        T, h, w = _conv_to_toeplitz(p["w"], p["scale"], h, w, p["stride"])
        mats.append(T)
        if p["has_bn"]:
            biases.append(jnp.tile(p["bias"], h * w)[None, :].astype(jnp.float32))
    cout = LAYER_CFG[-1][1]
    ho, wo = h, w
    # Final layer is computed on the VPU as a row-vector reduce; this is
    # specialized to the spec's occ_map_size/16 output (1x1x1 here).
    assert mats[-1].shape[1] == ho * wo * cout == 1, mats[-1].shape
    t5_row = mats[-1].reshape(1, -1).astype(jnp.float32)      # (1, 8)
    mats_bf16 = tuple(m.astype(jnp.bfloat16) for m in mats[:-1])
    return mats_bf16, t5_row, tuple(biases), (H, W, ho, wo, cout)


# ----------------------------------------------------------------------------
# Parameter init (deterministic, synthetic)
# ----------------------------------------------------------------------------
def init_params(key):
    params = []
    for (cin, cout, stride, has_bn, act) in LAYER_CFG:
        key, kw, kg, kb, km, kv = jax.random.split(key, 6)
        w = 0.1 * jax.random.normal(kw, (3, 3, cin, cout), jnp.float32)  # HWIO
        if has_bn:
            gamma = 1.0 + 0.1 * jax.random.normal(kg, (cout,), jnp.float32)
            beta = 0.1 * jax.random.normal(kb, (cout,), jnp.float32)
            mean = 0.1 * jax.random.normal(km, (cout,), jnp.float32)
            var = 1.0 + 0.1 * jnp.abs(jax.random.normal(kv, (cout,), jnp.float32))
            scale = gamma / jnp.sqrt(var + BN_EPS)
            bias = beta - mean * scale
        else:
            scale = jnp.ones((cout,), jnp.float32)
            bias = jnp.zeros((cout,), jnp.float32)
        params.append(dict(w=w, scale=scale, bias=bias, stride=stride,
                           act=act, has_bn=has_bn))
    return params


# ----------------------------------------------------------------------------
# Forward pass (single ungridded Pallas call) and pure-JAX reference
# ----------------------------------------------------------------------------
def build_forward(meta):
    """meta carries the (static) spatial sizes the weights were folded for."""
    H, W, ho, wo, cout = meta

    def fwd(x_nchw, mats, t5_row, biases):
        N, Cin, Hx, Wx = x_nchw.shape
        # The Toeplitz matrices are baked for (1, H, W); reject mismatches.
        assert (Cin, Hx, Wx) == (1, H, W), (Cin, Hx, Wx, H, W)

        x_flat = jnp.transpose(x_nchw, (0, 2, 3, 1)).reshape(N, H * W * Cin)
        operands = [x_flat, *mats, t5_row, *biases]

        # Advisory cost estimate: lets XLA overlap the weight DMA with
        # surrounding ops in an enclosing jit.
        flops = 2 * N * sum(int(m.shape[0]) * int(m.shape[1]) for m in mats)
        flops += 2 * N * int(t5_row.size)
        bytes_accessed = (sum(int(a.size) * a.dtype.itemsize for a in operands)
                          + N * ho * wo * cout * 4)
        cost = pl.CostEstimate(flops=flops,
                               transcendentals=N * ho * wo * cout,
                               bytes_accessed=bytes_accessed)

        out = pl.pallas_call(
            _disc_kernel,
            out_shape=jax.ShapeDtypeStruct((N, ho * wo * cout), jnp.float32),
            # Ungridded, single-buffered, whole-array VMEM residency: no
            # pipeline double-buffers or prologue/epilogue bookkeeping.
            in_specs=[pl.BlockSpec(memory_space=pltpu.MemorySpace.VMEM)
                      for _ in operands],
            out_specs=pl.BlockSpec(memory_space=pltpu.MemorySpace.VMEM),
            cost_estimate=cost,
        )(*operands)

        return jnp.transpose(out.reshape(N, ho, wo, cout), (0, 3, 1, 2))

    return jax.jit(fwd)


def discriminator_reference(x_nchw, params):
    x = jnp.transpose(x_nchw, (0, 2, 3, 1))
    for p in params:
        y = lax.conv_general_dilated(
            x, p["w"], window_strides=(p["stride"], p["stride"]),
            padding=((1, 1), (1, 1)),
            dimension_numbers=("NHWC", "HWIO", "NHWC"))
        y = y * p["scale"][None, None, None, :] + p["bias"][None, None, None, :]
        if p["act"] == "leaky":
            y = jnp.where(y > 0, y, NEG_SLOPE * y)
        else:
            y = jax.nn.sigmoid(y)
        x = y
    return jnp.transpose(x, (0, 3, 1, 2))


if __name__ == "__main__":
    key = jax.random.PRNGKey(0)
    k_par, k_in = jax.random.split(key)
    params = init_params(k_par)

    # (batch=2, channels=1, occ_map_size=16, occ_map_size=16) NCHW
    x = jax.random.normal(k_in, (2, 1, 16, 16), jnp.float32)

    # One-time weight preprocessing (input independent).
    mats, t5_row, biases, meta = fold_params(params, H=16, W=16)
    fwd = build_forward(meta)

    out = jax.block_until_ready(fwd(x, mats, t5_row, biases))
    ref = jax.block_until_ready(discriminator_reference(x, params))

    assert out.shape == (2, 1, 1, 1), out.shape
    # Tolerance relaxed vs. the f32 reference because T1..T4 are bf16
    # (f32 accumulate); observed error is ~1e-3, this leaves margin.
    assert jnp.allclose(out, ref, atol=2e-2, rtol=2e-2), (out, ref)
    print("KERNEL_OK")
</pallas_src>

<mosaic_0001>
module attributes {stable_mosaic.version = 11 : i64} {
  func.func @_disc_kernel(%arg0: memref<2x256xf32, #tpu.memory_space<vmem>>, %arg1: memref<256x512xbf16, #tpu.memory_space<vmem>>, %arg2: memref<512x256xbf16, #tpu.memory_space<vmem>>, %arg3: memref<256x128xbf16, #tpu.memory_space<vmem>>, %arg4: memref<128x8xbf16, #tpu.memory_space<vmem>>, %arg5: memref<1x8xf32, #tpu.memory_space<vmem>>, %arg6: memref<1x256xf32, #tpu.memory_space<vmem>>, %arg7: memref<1x128xf32, #tpu.memory_space<vmem>>, %arg8: memref<1x8xf32, #tpu.memory_space<vmem>>, %arg9: memref<2x1xf32, #tpu.memory_space<vmem>>) attributes {dimension_semantics = [], scalar_prefetch = 0 : i64, scratch_operands = 0 : i64, tpu.core_type = #tpu.core_type<tc>} {
    %c0 = arith.constant 0 : index
    %c0_0 = arith.constant 0 : index
    %0 = vector.load %arg0[%c0, %c0_0] : memref<2x256xf32, #tpu.memory_space<vmem>>, vector<2x256xf32>
    %1 = arith.truncf %0 : vector<2x256xf32> to vector<2x256xbf16>
    %c0_1 = arith.constant 0 : index
    %c0_2 = arith.constant 0 : index
    %2 = vector.load %arg1[%c0_1, %c0_2] : memref<256x512xbf16, #tpu.memory_space<vmem>>, vector<256x512xbf16>
    %cst = arith.constant dense<0.000000e+00> : vector<2x512xf32>
    %3 = tpu.matmul %1, %2, %cst {dimension_numbers = #tpu.dot_dimension_numbers<[1], [0], [0], [1], [0, 0, 1, 1], [], []>} : vector<2x256xbf16>, vector<256x512xbf16>, vector<2x512xf32> -> vector<2x512xf32>
    %cst_3 = arith.constant 0.000000e+00 : f32
    %4 = vector.broadcast %cst_3 : f32 to vector<2x512xf32>
    %5 = arith.cmpf ogt, %3, %4 : vector<2x512xf32>
    %cst_4 = arith.constant 2.000000e-01 : f32
    %6 = vector.broadcast %cst_4 : f32 to vector<2x512xf32>
    %7 = arith.mulf %6, %3 : vector<2x512xf32>
    %8 = arith.select %5, %3, %7 : vector<2x512xi1>, vector<2x512xf32>
    %9 = arith.truncf %8 : vector<2x512xf32> to vector<2x512xbf16>
    %c0_5 = arith.constant 0 : index
    %c0_6 = arith.constant 0 : index
    %10 = vector.load %arg2[%c0_5, %c0_6] : memref<512x256xbf16, #tpu.memory_space<vmem>>, vector<512x256xbf16>
    %cst_7 = arith.constant dense<0.000000e+00> : vector<2x256xf32>
    %11 = tpu.matmul %9, %10, %cst_7 {dimension_numbers = #tpu.dot_dimension_numbers<[1], [0], [0], [1], [0, 0, 1, 1], [], []>} : vector<2x512xbf16>, vector<512x256xbf16>, vector<2x256xf32> -> vector<2x256xf32>
    %c0_8 = arith.constant 0 : index
    %c0_9 = arith.constant 0 : index
    %12 = vector.load %arg6[%c0_8, %c0_9] : memref<1x256xf32, #tpu.memory_space<vmem>>, vector<1x256xf32>
    %13 = vector.broadcast %12 : vector<1x256xf32> to vector<2x256xf32>
    %14 = arith.addf %11, %13 : vector<2x256xf32>
    %cst_10 = arith.constant 0.000000e+00 : f32
    %15 = vector.broadcast %cst_10 : f32 to vector<2x256xf32>
    %16 = arith.cmpf ogt, %14, %15 : vector<2x256xf32>
    %cst_11 = arith.constant 2.000000e-01 : f32
    %17 = vector.broadcast %cst_11 : f32 to vector<2x256xf32>
    %18 = arith.mulf %17, %14 : vector<2x256xf32>
    %19 = arith.select %16, %14, %18 : vector<2x256xi1>, vector<2x256xf32>
    %20 = arith.truncf %19 : vector<2x256xf32> to vector<2x256xbf16>
    %c0_12 = arith.constant 0 : index
    %c0_13 = arith.constant 0 : index
    %21 = vector.load %arg3[%c0_12, %c0_13] : memref<256x128xbf16, #tpu.memory_space<vmem>>, vector<256x128xbf16>
    %cst_14 = arith.constant dense<0.000000e+00> : vector<2x128xf32>
    %22 = tpu.matmul %20, %21, %cst_14 {dimension_numbers = #tpu.dot_dimension_numbers<[1], [0], [0], [1], [0, 0, 1, 1], [], []>} : vector<2x256xbf16>, vector<256x128xbf16>, vector<2x128xf32> -> vector<2x128xf32>
    %c0_15 = arith.constant 0 : index
    %c0_16 = arith.constant 0 : index
    %23 = vector.load %arg7[%c0_15, %c0_16] : memref<1x128xf32, #tpu.memory_space<vmem>>, vector<1x128xf32>
    %24 = vector.broadcast %23 : vector<1x128xf32> to vector<2x128xf32>
    %25 = arith.addf %22, %24 : vector<2x128xf32>
    %cst_17 = arith.constant 0.000000e+00 : f32
    %26 = vector.broadcast %cst_17 : f32 to vector<2x128xf32>
    %27 = arith.cmpf ogt, %25, %26 : vector<2x128xf32>
    %cst_18 = arith.constant 2.000000e-01 : f32
    %28 = vector.broadcast %cst_18 : f32 to vector<2x128xf32>
    %29 = arith.mulf %28, %25 : vector<2x128xf32>
    %30 = arith.select %27, %25, %29 : vector<2x128xi1>, vector<2x128xf32>
    %31 = arith.truncf %30 : vector<2x128xf32> to vector<2x128xbf16>
    %c0_19 = arith.constant 0 : index
    %c0_20 = arith.constant 0 : index
    %32 = vector.load %arg4[%c0_19, %c0_20] : memref<128x8xbf16, #tpu.memory_space<vmem>>, vector<128x8xbf16>
    %cst_21 = arith.constant dense<0.000000e+00> : vector<2x8xf32>
    %33 = tpu.matmul %31, %32, %cst_21 {dimension_numbers = #tpu.dot_dimension_numbers<[1], [0], [0], [1], [0, 0, 1, 1], [], []>} : vector<2x128xbf16>, vector<128x8xbf16>, vector<2x8xf32> -> vector<2x8xf32>
    %c0_22 = arith.constant 0 : index
    %c0_23 = arith.constant 0 : index
    %34 = vector.load %arg8[%c0_22, %c0_23] : memref<1x8xf32, #tpu.memory_space<vmem>>, vector<1x8xf32>
    %35 = vector.broadcast %34 : vector<1x8xf32> to vector<2x8xf32>
    %36 = arith.addf %33, %35 : vector<2x8xf32>
    %cst_24 = arith.constant 0.000000e+00 : f32
    %37 = vector.broadcast %cst_24 : f32 to vector<2x8xf32>
    %38 = arith.cmpf ogt, %36, %37 : vector<2x8xf32>
    %cst_25 = arith.constant 2.000000e-01 : f32
    %39 = vector.broadcast %cst_25 : f32 to vector<2x8xf32>
    %40 = arith.mulf %39, %36 : vector<2x8xf32>
    %41 = arith.select %38, %36, %40 : vector<2x8xi1>, vector<2x8xf32>
    %c0_26 = arith.constant 0 : index
    %c0_27 = arith.constant 0 : index
    %42 = vector.load %arg5[%c0_26, %c0_27] : memref<1x8xf32, #tpu.memory_space<vmem>>, vector<1x8xf32>
    %43 = vector.broadcast %42 : vector<1x8xf32> to vector<2x8xf32>
    %44 = arith.mulf %41, %43 : vector<2x8xf32>
    %cst_28 = arith.constant dense<0.000000e+00> : vector<2xf32>
    %45 = vector.multi_reduction <add>, %44, %cst_28 [1] : vector<2x8xf32> to vector<2xf32>
    %46 = vector.shape_cast %45 : vector<2xf32> to vector<2x1xf32>
    %47 = arith.negf %46 : vector<2x1xf32>
    %48 = math.exp %47 : vector<2x1xf32>
    %cst_29 = arith.constant 1.000000e+00 : f32
    %49 = vector.broadcast %cst_29 : f32 to vector<2x1xf32>
    %50 = arith.addf %49, %48 : vector<2x1xf32>
    %51 = arith.divf %49, %50 : vector<2x1xf32>
    %c0_30 = arith.constant 0 : index
    %c0_31 = arith.constant 0 : index
    %52 = vector.load %arg9[%c0_30, %c0_31] : memref<2x1xf32, #tpu.memory_space<vmem>>, vector<2x1xf32>
    tpu.vector_store %arg9[%c0_30, %c0_31], %51 {strides = array<i32>} : memref<2x1xf32, #tpu.memory_space<vmem>>, vector<2x1xf32>,
    return
  }
}

</mosaic_0001>

<bundles_post_ra>
// kernel: fwd.1
= control target key start
LH: loop header
LB: loop body
LE: loop exit
PB: predicated region body
PF: predicated region fallthrough
CT: control target
= control target key end

     0   :  { %14 = vsyncpa [#allocation3], 0  ;;  %s2351_s0 = inlined_call_operand.vmem [shape: f32[2,256], index: 0, kind: input, shape index: {}]   ;;  %s2352_s1 = inlined_call_operand.hbm [shape: bf16[256,512], index: 1, kind: input, shape index: {}]   ;;  %s2353_s2 = inlined_call_operand.hbm [shape: bf16[512,256], index: 2, kind: input, shape index: {}]   ;;  %s2354_s3 = inlined_call_operand.hbm [shape: bf16[256,128], index: 3, kind: input, shape index: {}]   ;;  %s2355_s4 = inlined_call_operand.vmem [shape: bf16[128,8], index: 4, kind: input, shape index: {}]   ;;  %s2356_s5 = inlined_call_operand.vmem [shape: f32[1,8], index: 5, kind: input, shape index: {}]   ;;  %s2357_s6 = inlined_call_operand.vmem [shape: f32[1,256], index: 6, kind: input, shape index: {}]   ;;  %s2358_s7 = inlined_call_operand.vmem [shape: f32[1,128], index: 7, kind: input, shape index: {}]   ;;  %s2359_s8 = inlined_call_operand.vmem [shape: f32[1,8], index: 8, kind: input, shape index: {}]   ;;  %s2360_s9 = inlined_call_operand.vmem [shape: f32[2,1], index: 9, kind: output, shape index: {}]  }
   0x1   :  { %15 = vsyncpa [#allocation5], 0  ;;  %s35_s11 = sshll.u32 %s2353_s2, 4  ;;  %s2229_s12 = smov [#allocation4]   ;;  %s36_s11 = int_to_ptr.hbm [resolvable:$true] %s35_s11 }
   0x2   :  { %s37_s13 = sshll.u32 %s2229_s12, 4  ;;  %s22_s16 = sshll.u32 %s2352_s1, 4  ;;  %s38_s13 = int_to_ptr.vmem [resolvable:$true] %s37_s13  ;;  %s23_s16 = int_to_ptr.hbm [resolvable:$true] %s22_s16 }
   0x3   :  { %s2230_s17 = smov 128   ;;  %s2231_s18 = smov 8  }
   0x4   :  { %43 = dma.hbm_to_vmem [thread:$0]  %s36_s11, 8192, %s38_s13, [#allocation5], %s2230_s17, %s2230_s17, %s2231_s18  }
   0x5   :  { %s2232_s19 = smov [#allocation2]   ;;  %s2233_s21 = smov 256  }
   0x6   :  { %s24_s20 = sshll.u32 %s2232_s19, 4  ;;  %s2234_s22 = smov 16   ;;  %s25_s20 = int_to_ptr.vmem [resolvable:$true] %s24_s20 }
   0x7   :  { %30 = dma.hbm_to_vmem [thread:$0]  %s23_s16, 8192, %s25_s20, [#allocation3], %s2233_s21, %s2233_s21, %s2234_s22  }
   0x8   :  { %s48_s24 = sshll.u32 %s2354_s3, 4  ;;  %s2235_s25 = smov [#allocation6]   ;;  %s49_s24 = int_to_ptr.hbm [resolvable:$true] %s48_s24 }
   0x9   :  { %s50_s26 = sshll.u32 %s2235_s25, 4  ;;  %s2236_s27 = smov 64   ;;  %s51_s26 = int_to_ptr.vmem [resolvable:$true] %s50_s26 }
   0xa   :  { %s2237_s1 = smov 4  }
   0xb   :  { %56 = dma.hbm_to_vmem [thread:$0]  %s49_s24, 2048, %s51_s26, [#allocation5], %s2236_s27, %s2236_s27, %s2237_s1  }
   0xc   :  { %2225 = dma.done.wait [#allocation3], 8192  }
   0xd   :  { %2226 = vsyncadd [#allocation3], 4294959104 }
   0xe   :  { %2227 = dma.done.wait [#allocation5], 10240  }
   0xf   :  { %2228 = vsyncadd [#allocation5], 4294957056  ;;  %v1490_v0 = vld [vmem:[#allocation2 + $0xe0] sm:$0xf]  ;;  %v2015_v1 = vld [vmem:[#allocation2 + $0xec] sm:$0xf0] }
  0x10   :  { %v1618_v2 = vld [vmem:[#allocation2 + $0x1e0] sm:$0xf]  ;;  %v1491_v3 = vor.u32 %v2015_v1, %v1490_v0  ;;  %v2047_v4 = vld [vmem:[#allocation2 + $0x1ec] sm:$0xf0]  ;;  %v2013_v5 = vld [vmem:[#allocation2 + $0xe4] sm:$0xf] }
  0x11   :  { %v1492_v6 = vld [vmem:[#allocation2 + $0xf0] sm:$0xf0]  ;;  %v1619_v7 = vor.u32 %v2047_v4, %v1618_v2  ;;  %v2045_v9 = vld [vmem:[#allocation2 + $0x1e4] sm:$0xf]  ;;  %v1474_v11 = vld [vmem:[#allocation2 + $0xc0] sm:$0xf] }
  0x12   :  { %v1495_v8 = vor.u32 %v2013_v5, %v1492_v6  ;;  %v1620_v10 = vld [vmem:[#allocation2 + $0x1f0] sm:$0xf0]  ;;  %472 = vmatpush.bf16.msra.mxu0 %v1491_v3  ;;  %v2011_v13 = vld [vmem:[#allocation2 + $0xcc] sm:$0xf0]  ;;  %v1602_v14 = vld [vmem:[#allocation2 + $0x1c0] sm:$0xf] }
  0x13   :  { %v1623_v12 = vor.u32 %v2045_v9, %v1620_v10  ;;  %v2043_v15 = vld [vmem:[#allocation2 + $0x1cc] sm:$0xf0]  ;;  %485 = vmatpush.bf16.msra.mxu1 %v1619_v7  ;;  %v1475_v16 = vor.u32 %v2011_v13, %v1474_v11  ;;  %v2009_v18 = vld [vmem:[#allocation2 + $0xc4] sm:$0xf]  ;;  %v1476_v19 = vld [vmem:[#allocation2 + $0xd0] sm:$0xf0] }
  0x14   :  { %498 = vmatpush.bf16.msra.mxu2 %v1495_v8  ;;  %v1603_v17 = vor.u32 %v2043_v15, %v1602_v14  ;;  %v2041_v20 = vld [vmem:[#allocation2 + $0x1c4] sm:$0xf]  ;;  %v1479_v21 = vor.u32 %v2009_v18, %v1476_v19  ;;  %v1604_v22 = vld [vmem:[#allocation2 + $0x1d0] sm:$0xf0]  ;;  %v1458_v23 = vld [vmem:[#allocation2 + $0xa0] sm:$0xf] }
  0x15   :  { %511 = vmatpush.bf16.msra.mxu3 %v1623_v12  ;;  %v2007_v24 = vld [vmem:[#allocation2 + $0xac] sm:$0xf0]  ;;  %v1607_v25 = vor.u32 %v2041_v20, %v1604_v22  ;;  %v1586_v26 = vld [vmem:[#allocation2 + $0x1a0] sm:$0xf]  ;;  %v2005_v28 = vld [vmem:[#allocation2 + $0xa4] sm:$0xf] }
  0x16   :  { %v2039_v27 = vld [vmem:[#allocation2 + $0x1ac] sm:$0xf0]  ;;  %473 = vmatpush.bf16.msra.mxu0 %v1475_v16  ;;  %v1459_v29 = vor.u32 %v2007_v24, %v1458_v23  ;;  %v1460_v30 = vld [vmem:[#allocation2 + $0xb0] sm:$0xf0]  ;;  %v2037_v31 = vld [vmem:[#allocation2 + $0x1a4] sm:$0xf] }
  0x17   :  { %v1588_v32 = vld [vmem:[#allocation2 + $0x1b0] sm:$0xf0]  ;;  %486 = vmatpush.bf16.msra.mxu1 %v1603_v17  ;;  %v1587_v33 = vor.u32 %v2039_v27, %v1586_v26  ;;  %v1463_v34 = vor.u32 %v2005_v28, %v1460_v30  ;;  %v1442_v35 = vld [vmem:[#allocation2 + $0x80] sm:$0xf]  ;;  %v2003_v36 = vld [vmem:[#allocation2 + $0x8c] sm:$0xf0] }
  0x18   :  { %499 = vmatpush.bf16.msra.mxu2 %v1479_v21  ;;  %v1570_v37 = vld [vmem:[#allocation2 + $0x180] sm:$0xf]  ;;  %v1591_v38 = vor.u32 %v2037_v31, %v1588_v32  ;;  %v2035_v39 = vld [vmem:[#allocation2 + $0x18c] sm:$0xf0]  ;;  %v2001_v40 = vld [vmem:[#allocation2 + $0x84] sm:$0xf]  ;;  %v1443_v44 = vor.u32 %v2003_v36, %v1442_v35 }
  0x19   :  { %512 = vmatpush.bf16.msra.mxu3 %v1607_v25  ;;  %v1444_v41 = vld [vmem:[#allocation2 + $0x90] sm:$0xf0]  ;;  %v2033_v42 = vld [vmem:[#allocation2 + $0x184] sm:$0xf]  ;;  %v1571_v45 = vor.u32 %v2035_v39, %v1570_v37  ;;  %v1426_v47 = vld [vmem:[#allocation2 + $0x60] sm:$0xf] }
  0x1a   :  { %v1572_v43 = vld [vmem:[#allocation2 + $0x190] sm:$0xf0]  ;;  %474 = vmatpush.bf16.msra.mxu0 %v1459_v29  ;;  %v1447_v46 = vor.u32 %v2001_v40, %v1444_v41  ;;  %v1999_v48 = vld [vmem:[#allocation2 + $0x6c] sm:$0xf0]  ;;  %v1554_v49 = vld [vmem:[#allocation2 + $0x160] sm:$0xf] }
  0x1b   :  { %487 = vmatpush.bf16.msra.mxu1 %v1587_v33  ;;  %v1575_v50 = vor.u32 %v2033_v42, %v1572_v43  ;;  %v2031_v51 = vld [vmem:[#allocation2 + $0x16c] sm:$0xf0]  ;;  %v1997_v52 = vld [vmem:[#allocation2 + $0x64] sm:$0xf]  ;;  %v1428_v53 = vld [vmem:[#allocation2 + $0x70] sm:$0xf0]  ;;  %v1427_v56 = vor.u32 %v1999_v48, %v1426_v47 }
  0x1c   :  { %500 = vmatpush.bf16.msra.mxu2 %v1463_v34  ;;  %v2029_v54 = vld [vmem:[#allocation2 + $0x164] sm:$0xf]  ;;  %v1556_v55 = vld [vmem:[#allocation2 + $0x170] sm:$0xf0]  ;;  %v1555_v57 = vor.u32 %v2031_v51, %v1554_v49  ;;  %v1431_v58 = vor.u32 %v1997_v52, %v1428_v53  ;;  %v1410_v59 = vld [vmem:[#allocation2 + $0x40] sm:$0xf] }
  0x1d   :  { %513 = vmatpush.bf16.msra.mxu3 %v1591_v38  ;;  %v1995_v60 = vld [vmem:[#allocation2 + $0x4c] sm:$0xf0]  ;;  %v1538_v61 = vld [vmem:[#allocation2 + $0x140] sm:$0xf]  ;;  %v1559_v62 = vor.u32 %v2029_v54, %v1556_v55  ;;  %v1993_v0 = vld [vmem:[#allocation2 + $0x44] sm:$0xf] }
  0x1e   :  { %475 = vmatpush.bf16.msra.mxu0 %v1443_v44  ;;  %v2027_v63 = vld [vmem:[#allocation2 + $0x14c] sm:$0xf0]  ;;  %v1412_v1 = vld [vmem:[#allocation2 + $0x50] sm:$0xf0]  ;;  %v2025_v2 = vld [vmem:[#allocation2 + $0x144] sm:$0xf]  ;;  %v1411_v4 = vor.u32 %v1995_v60, %v1410_v59 }
  0x1f   :  { %488 = vmatpush.bf16.msra.mxu1 %v1571_v45  ;;  %v1540_v3 = vld [vmem:[#allocation2 + $0x150] sm:$0xf0]  ;;  %v1539_v5 = vor.u32 %v2027_v63, %v1538_v61  ;;  %v1415_v6 = vor.u32 %v1993_v0, %v1412_v1  ;;  %v1394_v7 = vld [vmem:[#allocation2 + $0x20] sm:$0xf]  ;;  %v1991_v8 = vld [vmem:[#allocation2 + $0x2c] sm:$0xf0] }
  0x20   :  { %501 = vmatpush.bf16.msra.mxu2 %v1447_v46  ;;  %v1522_v9 = vld [vmem:[#allocation2 + $0x120] sm:$0xf]  ;;  %v1543_v10 = vor.u32 %v2025_v2, %v1540_v3  ;;  %v2023_v11 = vld [vmem:[#allocation2 + $0x12c] sm:$0xf0]  ;;  %v1989_v12 = vld [vmem:[#allocation2 + $0x24] sm:$0xf]  ;;  %v1395_v17 = vor.u32 %v1991_v8, %v1394_v7 }
  0x21   :  { %514 = vmatpush.bf16.msra.mxu3 %v1575_v50  ;;  %v1396_v13 = vld [vmem:[#allocation2 + $0x30] sm:$0xf0]  ;;  %v2021_v14 = vld [vmem:[#allocation2 + $0x124] sm:$0xf]  ;;  %v1378_v16 = vld [vmem:[#allocation2] sm:$0xf]  ;;  %v1523_v21 = vor.u32 %v2023_v11, %v1522_v9 }
  0x22   :  { %476 = vmatpush.bf16.msra.mxu0 %v1427_v56  ;;  %v1524_v15 = vld [vmem:[#allocation2 + $0x130] sm:$0xf0]  ;;  %v1987_v18 = vld [vmem:[#allocation2 + $0xc] sm:$0xf0]  ;;  %v1506_v19 = vld [vmem:[#allocation2 + $0x100] sm:$0xf]  ;;  %v1399_v22 = vor.u32 %v1989_v12, %v1396_v13 }
  0x23   :  { %489 = vmatpush.bf16.msra.mxu1 %v1555_v57  ;;  %v2019_v20 = vld [vmem:[#allocation2 + $0x10c] sm:$0xf0]  ;;  %v1985_v23 = vld [vmem:[#allocation2 + $0x4] sm:$0xf]  ;;  %v1380_v24 = vld [vmem:[#allocation2 + $0x10] sm:$0xf0]  ;;  %v1527_v26 = vor.u32 %v2021_v14, %v1524_v15  ;;  %v1379_v32 = vor.u32 %v1987_v18, %v1378_v16 }
  0x24   :  { %502 = vmatpush.bf16.msra.mxu2 %v1431_v58  ;;  %v79_v25 = vld [vmem:[%s2351_s0] sm:$0xf]  ;;  %v2017_v27 = vld [vmem:[#allocation2 + $0x104] sm:$0xf]  ;;  %v1508_v28 = vld [vmem:[#allocation2 + $0x110] sm:$0xf0]  ;;  %v1507_v36 = vor.u32 %v2019_v20, %v1506_v19  ;;  %v1383_v37 = vor.u32 %v1985_v23, %v1380_v24 }
  0x25   :  { %515 = vmatpush.bf16.msra.mxu3 %v1559_v62  ;;  %81 = vst [vmem:[#allocation1] ss:$4 sm:$0xff] %v79_v25  ;;  %v1498_v29 = vld [vmem:[#allocation2 + $0xe8] sm:$0xf]  ;;  %v2016_v30 = vld [vmem:[#allocation2 + $0xf4] sm:$0xf0]  ;;  %v1511_v40 = vor.u32 %v2017_v27, %v1508_v28 }
  0x26   :  { %477 = vmatpush.bf16.msra.mxu0 %v1411_v4  ;;  %v1626_v31 = vld [vmem:[#allocation2 + $0x1e8] sm:$0xf]  ;;  %v2048_v33 = vld [vmem:[#allocation2 + $0x1f4] sm:$0xf0]  ;;  %v2014_v34 = vld [vmem:[#allocation2 + $0xec] sm:$0xf]  ;;  %v1499_v41 = vor.u32 %v2016_v30, %v1498_v29 }
  0x27   :  { %490 = vmatpush.bf16.msra.mxu1 %v1539_v5  ;;  %v1500_v35 = vld [vmem:[#allocation2 + $0xf8] sm:$0xf0]  ;;  %v2046_v38 = vld [vmem:[#allocation2 + $0x1ec] sm:$0xf]  ;;  %v1482_v42 = vld [vmem:[#allocation2 + $0xc8] sm:$0xf]  ;;  %v1627_v44 = vor.u32 %v2048_v33, %v1626_v31 }
  0x28   :  { %503 = vmatpush.bf16.msra.mxu2 %v1415_v6  ;;  %v1628_v39 = vld [vmem:[#allocation2 + $0x1f8] sm:$0xf0]  ;;  %v2012_v43 = vld [vmem:[#allocation2 + $0xd4] sm:$0xf0]  ;;  %v1503_v45 = vor.u32 %v2014_v34, %v1500_v35  ;;  %v1610_v46 = vld [vmem:[#allocation2 + $0x1c8] sm:$0xf] }
  0x29   :  { %516 = vmatpush.bf16.msra.mxu3 %v1543_v10  ;;  %v2044_v47 = vld [vmem:[#allocation2 + $0x1d4] sm:$0xf0]  ;;  %v2010_v48 = vld [vmem:[#allocation2 + $0xcc] sm:$0xf]  ;;  %v1631_v49 = vor.u32 %v2046_v38, %v1628_v39  ;;  %v1484_v50 = vld [vmem:[#allocation2 + $0xd8] sm:$0xf0]  ;;  %v1483_v57 = vor.u32 %v2012_v43, %v1482_v42 }
  0x2a   :  { %478 = vmatpush.bf16.msra.mxu0 %v1395_v17  ;;  %v2042_v51 = vld [vmem:[#allocation2 + $0x1cc] sm:$0xf]  ;;  %v1612_v52 = vld [vmem:[#allocation2 + $0x1d8] sm:$0xf0]  ;;  %v1611_v58 = vor.u32 %v2044_v47, %v1610_v46  ;;  %v1487_v59 = vor.u32 %v2010_v48, %v1484_v50  ;;  %v1466_v60 = vld [vmem:[#allocation2 + $0xa8] sm:$0xf] }
  0x2b   :  { %491 = vmatpush.bf16.msra.mxu1 %v1523_v21  ;;  %v2008_v61 = vld [vmem:[#allocation2 + $0xb4] sm:$0xf0]  ;;  %v1594_v62 = vld [vmem:[#allocation2 + $0x1a8] sm:$0xf]  ;;  %v1615_v63 = vor.u32 %v2042_v51, %v1612_v52  ;;  %v2006_v1 = vld [vmem:[#allocation2 + $0xac] sm:$0xf] }
  0x2c   :  { %504 = vmatpush.bf16.msra.mxu2 %v1399_v22  ;;  %v82_v53 = vld.sshfl [vmem:[#allocation1] sm:$0xff pattern:$0x73625140]  ;;  %v83_v54 = vld.sshfl [vmem:[#allocation1 + $0x8] sm:$0xff pattern:$0x73625140]  ;;  %v1467_v5 = vor.u32 %v2008_v61, %v1466_v60 }
  0x2d   :  { %517 = vmatpush.bf16.msra.mxu3 %v1527_v26  ;;  %v2300_v55 = vpack.c.bf16 %v82_v53, %v82_v53  ;;  %v2302_v56 = vpack.c.bf16 %v83_v54, %v83_v54  ;;  %v2040_v0 = vld [vmem:[#allocation2 + $0x1b4] sm:$0xf0]  ;;  %v1468_v2 = vld [vmem:[#allocation2 + $0xb8] sm:$0xf0]  ;;  %v2038_v3 = vld [vmem:[#allocation2 + $0x1ac] sm:$0xf] }
  0x2e   :  { %479 = vmatpush.bf16.msra.mxu0 %v1379_v32  ;;  %v1596_v4 = vld [vmem:[#allocation2 + $0x1b8] sm:$0xf0]  ;;  %v1595_v6 = vor.u32 %v2040_v0, %v1594_v62  ;;  %v1471_v7 = vor.u32 %v2006_v1, %v1468_v2  ;;  %v1450_v8 = vld [vmem:[#allocation2 + $0x88] sm:$0xf]  ;;  %v2004_v9 = vld [vmem:[#allocation2 + $0x94] sm:$0xf0] }
  0x2f   :  { %492 = vmatpush.bf16.msra.mxu1 %v1507_v36  ;;  %v1578_v10 = vld [vmem:[#allocation2 + $0x188] sm:$0xf]  ;;  %v1599_v11 = vor.u32 %v2038_v3, %v1596_v4  ;;  %v2036_v12 = vld [vmem:[#allocation2 + $0x194] sm:$0xf0]  ;;  %v2002_v13 = vld [vmem:[#allocation2 + $0x8c] sm:$0xf]  ;;  %v1451_v17 = vor.u32 %v2004_v9, %v1450_v8 }
  0x30   :  { %505 = vmatpush.bf16.msra.mxu2 %v1383_v37  ;;  %v1452_v14 = vld [vmem:[#allocation2 + $0x98] sm:$0xf0]  ;;  %v2034_v15 = vld [vmem:[#allocation2 + $0x18c] sm:$0xf]  ;;  %v1579_v18 = vor.u32 %v2036_v12, %v1578_v10  ;;  %v1434_v20 = vld [vmem:[#allocation2 + $0x68] sm:$0xf] }
  0x31   :  { %518 = vmatpush.bf16.msra.mxu3 %v1511_v40  ;;  %480 = vmatmul.bf16.vlgmr.msra.gmra.mxu0 %v2300_v55  ;;  %v1580_v16 = vld [vmem:[#allocation2 + $0x198] sm:$0xf0]  ;;  %v1455_v19 = vor.u32 %v2002_v13, %v1452_v14  ;;  %v2000_v21 = vld [vmem:[#allocation2 + $0x74] sm:$0xf0]  ;;  %v1562_v22 = vld [vmem:[#allocation2 + $0x168] sm:$0xf] }
  0x32   :  { %524 = vmatpush.bf16.msrb.mxu0 %v1499_v41  ;;  %493 = vmatmul.bf16.vlgmr.msra.gmra.mxu1 %v2302_v56  ;;  %v1583_v23 = vor.u32 %v2034_v15, %v1580_v16  ;;  %v2032_v24 = vld [vmem:[#allocation2 + $0x174] sm:$0xf0]  ;;  %v1998_v25 = vld [vmem:[#allocation2 + $0x6c] sm:$0xf]  ;;  %v1436_v26 = vld [vmem:[#allocation2 + $0x78] sm:$0xf0]  ;;  %v1435_v29 = vor.u32 %v2000_v21, %v1434_v20 }
  0x33   :  { %537 = vmatpush.bf16.msrb.mxu1 %v1627_v44  ;;  %506 = vmatmul.bf16.vlgmr.msra.gmra.mxu2 %v2300_v55  ;;  %v2030_v27 = vld [vmem:[#allocation2 + $0x16c] sm:$0xf]  ;;  %v1564_v28 = vld [vmem:[#allocation2 + $0x178] sm:$0xf0]  ;;  %v1563_v30 = vor.u32 %v2032_v24, %v1562_v22  ;;  %v1439_v31 = vor.u32 %v1998_v25, %v1436_v26  ;;  %v1418_v32 = vld [vmem:[#allocation2 + $0x48] sm:$0xf] }
  0x34   :  { %550 = vmatpush.bf16.msrb.mxu2 %v1503_v45  ;;  %519 = vmatmul.bf16.vlgmr.msra.gmra.mxu3 %v2302_v56  ;;  %v1996_v33 = vld [vmem:[#allocation2 + $0x54] sm:$0xf0]  ;;  %v1546_v34 = vld [vmem:[#allocation2 + $0x148] sm:$0xf]  ;;  %v1567_v35 = vor.u32 %v2030_v27, %v1564_v28  ;;  %v1994_v37 = vld [vmem:[#allocation2 + $0x4c] sm:$0xf] }
  0x35   :  { %563 = vmatpush.bf16.msrb.mxu3 %v1631_v49  ;;  %v2028_v36 = vld [vmem:[#allocation2 + $0x154] sm:$0xf0]  ;;  %v1420_v38 = vld [vmem:[#allocation2 + $0x58] sm:$0xf0]  ;;  %v2026_v39 = vld [vmem:[#allocation2 + $0x14c] sm:$0xf]  ;;  %v1419_v41 = vor.u32 %v1996_v33, %v1418_v32 }
  0x36   :  { %525 = vmatpush.bf16.msrb.mxu0 %v1483_v57  ;;  %v1548_v40 = vld [vmem:[#allocation2 + $0x158] sm:$0xf0]  ;;  %v1402_v42 = vld [vmem:[#allocation2 + $0x28] sm:$0xf]  ;;  %v1547_v43 = vor.u32 %v2028_v36, %v1546_v34  ;;  %v1423_v44 = vor.u32 %v1994_v37, %v1420_v38  ;;  %v1992_v45 = vld [vmem:[#allocation2 + $0x34] sm:$0xf0] }
  0x37   :  { %538 = vmatpush.bf16.msrb.mxu1 %v1611_v58  ;;  %v1530_v46 = vld [vmem:[#allocation2 + $0x128] sm:$0xf]  ;;  %v2024_v47 = vld [vmem:[#allocation2 + $0x134] sm:$0xf0]  ;;  %v1551_v48 = vor.u32 %v2026_v39, %v1548_v40  ;;  %v1990_v49 = vld [vmem:[#allocation2 + $0x2c] sm:$0xf]  ;;  %v1403_v53 = vor.u32 %v1992_v45, %v1402_v42 }
  0x38   :  { %551 = vmatpush.bf16.msrb.mxu2 %v1487_v59  ;;  %v1404_v50 = vld [vmem:[#allocation2 + $0x38] sm:$0xf0]  ;;  %v2022_v51 = vld [vmem:[#allocation2 + $0x12c] sm:$0xf]  ;;  %v1386_v54 = vld [vmem:[#allocation2 + $0x8] sm:$0xf]  ;;  %v1531_v57 = vor.u32 %v2024_v47, %v1530_v46 }
  0x39   :  { %564 = vmatpush.bf16.msrb.mxu3 %v1615_v63  ;;  %v1532_v52 = vld [vmem:[#allocation2 + $0x138] sm:$0xf0]  ;;  %v1407_v58 = vor.u32 %v1990_v49, %v1404_v50  ;;  %v1988_v59 = vld [vmem:[#allocation2 + $0x14] sm:$0xf0]  ;;  %v1514_v60 = vld [vmem:[#allocation2 + $0x108] sm:$0xf] }
  0x3a   :  { %526 = vmatpush.bf16.msrb.mxu0 %v1467_v5  ;;  %v2020_v61 = vld [vmem:[#allocation2 + $0x114] sm:$0xf0]  ;;  %v1535_v62 = vor.u32 %v2022_v51, %v1532_v52  ;;  %v1986_v63 = vld [vmem:[#allocation2 + $0xc] sm:$0xf]  ;;  %v1388_v0 = vld [vmem:[#allocation2 + $0x18] sm:$0xf0]  ;;  %v1387_v5 = vor.u32 %v1988_v59, %v1386_v54 }
  0x3b   :  { %539 = vmatpush.bf16.msrb.mxu1 %v1595_v6  ;;  %v2018_v1 = vld [vmem:[#allocation2 + $0x10c] sm:$0xf]  ;;  %v1516_v2 = vld [vmem:[#allocation2 + $0x118] sm:$0xf0]  ;;  %v1690_v3 = vld [vmem:[#allocation4 + $0x70] sm:$0xf]  ;;  %v1515_v8 = vor.u32 %v2020_v61, %v1514_v60  ;;  %v1391_v9 = vor.u32 %v1986_v63, %v1388_v0 }
  0x3c   :  { %552 = vmatpush.bf16.msrb.mxu2 %v1471_v7  ;;  %v2064_v4 = vld [vmem:[#allocation4 + $0x74] sm:$0xf0]  ;;  %v1754_v6 = vld [vmem:[#allocation4 + $0xf0] sm:$0xf]  ;;  %v1519_v10 = vor.u32 %v2018_v1, %v1516_v2  ;;  %v1682_v14 = vld [vmem:[#allocation4 + $0x60] sm:$0xf] }
  0x3d   :  { %565 = vmatpush.bf16.msrb.mxu3 %v1599_v11  ;;  %v2080_v7 = vld [vmem:[#allocation4 + $0xf4] sm:$0xf0]  ;;  %v1691_v11 = vor.u32 %v2064_v4, %v1690_v3  ;;  %v1818_v12 = vld [vmem:[#allocation4 + $0x170] sm:$0xf]  ;;  %v2062_v15 = vld [vmem:[#allocation4 + $0x64] sm:$0xf0] }
  0x3e   :  { %527 = vmatpush.bf16.msrb.mxu0 %v1451_v17  ;;  %v2096_v13 = vld [vmem:[#allocation4 + $0x174] sm:$0xf0]  ;;  %v1755_v16 = vor.u32 %v2080_v7, %v1754_v6  ;;  %v1746_v17 = vld [vmem:[#allocation4 + $0xe0] sm:$0xf]  ;;  %v1683_v20 = vor.u32 %v2062_v15, %v1682_v14  ;;  %v2094_v22 = vld [vmem:[#allocation4 + $0x164] sm:$0xf0] }
  0x3f   :  { %540 = vmatpush.bf16.msrb.mxu1 %v1579_v18  ;;  %v2078_v18 = vld [vmem:[#allocation4 + $0xe4] sm:$0xf0]  ;;  %v1810_v21 = vld [vmem:[#allocation4 + $0x160] sm:$0xf]  ;;  %v2060_v24 = vld [vmem:[#allocation4 + $0x54] sm:$0xf0] }
  0x40   :  { %553 = vmatpush.bf16.msrb.mxu2 %v1455_v19  ;;  %v1819_v19 = vor.u32 %v2096_v13, %v1818_v12  ;;  %v1747_v25 = vor.u32 %v2078_v18, %v1746_v17  ;;  %v1882_v26 = vld [vmem:[#allocation4 + $0x1f0] sm:$0xf]  ;;  %v2076_v28 = vld [vmem:[#allocation4 + $0xd4] sm:$0xf0]  ;;  %v1666_v33 = vld [vmem:[#allocation4 + $0x40] sm:$0xf] }
  0x41   :  { %566 = vmatpush.bf16.msrb.mxu3 %v1583_v23  ;;  %v1674_v23 = vld [vmem:[#allocation4 + $0x50] sm:$0xf]  ;;  %v2058_v34 = vld [vmem:[#allocation4 + $0x44] sm:$0xf0]  ;;  %v1730_v36 = vld [vmem:[#allocation4 + $0xc0] sm:$0xf] }
  0x42   :  { %528 = vmatpush.bf16.msrb.mxu0 %v1435_v29  ;;  %v1738_v27 = vld [vmem:[#allocation4 + $0xd0] sm:$0xf]  ;;  %v2112_v29 = vld [vmem:[#allocation4 + $0x1f4] sm:$0xf0]  ;;  %v1675_v32 = vor.u32 %v2060_v24, %v1674_v23  ;;  %v2074_v37 = vld [vmem:[#allocation4 + $0xc4] sm:$0xf0] }
  0x43   :  { %541 = vmatpush.bf16.msrb.mxu1 %v1563_v30  ;;  %v1811_v30 = vor.u32 %v2094_v22, %v1810_v21  ;;  %v1658_v38 = vld [vmem:[#allocation4 + $0x30] sm:$0xf]  ;;  %v2056_v39 = vld [vmem:[#allocation4 + $0x34] sm:$0xf0]  ;;  %v1731_v40 = vor.u32 %v2074_v37, %v1730_v36  ;;  %v1714_v46 = vld [vmem:[#allocation4 + $0xa0] sm:$0xf] }
  0x44   :  { %554 = vmatpush.bf16.msrb.mxu2 %v1439_v31  ;;  %v1883_v31 = vor.u32 %v2112_v29, %v1882_v26  ;;  %v1659_v42 = vor.u32 %v2056_v39, %v1658_v38  ;;  %v2070_v47 = vld [vmem:[#allocation4 + $0xa4] sm:$0xf0]  ;;  %v1642_v49 = vld [vmem:[#allocation4 + $0x10] sm:$0xf]  ;;  %v2052_v50 = vld [vmem:[#allocation4 + $0x14] sm:$0xf0] }
  0x45   :  { %567 = vmatpush.bf16.msrb.mxu3 %v1567_v35  ;;  %v1739_v35 = vor.u32 %v2076_v28, %v1738_v27  ;;  %v1715_v51 = vor.u32 %v2070_v47, %v1714_v46  ;;  %v1706_v52 = vld [vmem:[#allocation4 + $0x90] sm:$0xf]  ;;  %v1643_v54 = vor.u32 %v2052_v50, %v1642_v49  ;;  %v2063_v59 = vld [vmem:[#allocation4 + $0x74] sm:$0xf]  ;;  %v1692_v61 = vld [vmem:[#allocation4 + $0x78] sm:$0xf0] }
  0x46   :  { %529 = vmatpush.bf16.msrb.mxu0 %v1419_v41  ;;  %v2072_v41 = vld [vmem:[#allocation4 + $0xb4] sm:$0xf0]  ;;  %v2066_v63 = vld [vmem:[#allocation4 + $0x84] sm:$0xf0]  ;;  %v2079_v0 = vld [vmem:[#allocation4 + $0xf4] sm:$0xf]  ;;  %v1695_v3 = vor.u32 %v2063_v59, %v1692_v61 }
  0x47   :  { %542 = vmatpush.bf16.msrb.mxu1 %v1547_v43  ;;  %v1650_v43 = vld [vmem:[#allocation4 + $0x20] sm:$0xf]  ;;  %v1756_v1 = vld [vmem:[#allocation4 + $0xf8] sm:$0xf0]  ;;  %v1684_v6 = vld [vmem:[#allocation4 + $0x68] sm:$0xf0] }
  0x48   :  { %555 = vmatpush.bf16.msrb.mxu2 %v1423_v44  ;;  %v2054_v44 = vld [vmem:[#allocation4 + $0x24] sm:$0xf0]  ;;  %v1759_v7 = vor.u32 %v2079_v0, %v1756_v1  ;;  %v1676_v13 = vld [vmem:[#allocation4 + $0x58] sm:$0xf0]  ;;  %v1874_v15 = vld [vmem:[#allocation4 + $0x1e0] sm:$0xf] }
  0x49   :  { %568 = vmatpush.bf16.msrb.mxu3 %v1551_v48  ;;  %v1651_v48 = vor.u32 %v2054_v44, %v1650_v43  ;;  %v2077_v17 = vld [vmem:[#allocation4 + $0xe4] sm:$0xf]  ;;  %v1794_v21 = vld [vmem:[#allocation4 + $0x140] sm:$0xf]  ;;  %v2090_v22 = vld [vmem:[#allocation4 + $0x144] sm:$0xf0] }
  0x4a   :  { %530 = vmatpush.bf16.msrb.mxu0 %v1403_v53  ;;  %v2068_v53 = vld [vmem:[#allocation4 + $0x94] sm:$0xf0]  ;;  %v2057_v23 = vld [vmem:[#allocation4 + $0x44] sm:$0xf]  ;;  %v1795_v24 = vor.u32 %v2090_v22, %v1794_v21  ;;  %v1866_v27 = vld [vmem:[#allocation4 + $0x1d0] sm:$0xf] }
  0x4b   :  { %543 = vmatpush.bf16.msrb.mxu1 %v1531_v57  ;;  %v1634_v57 = vld [vmem:[#allocation4] sm:$0xf]  ;;  %v1707_v60 = vor.u32 %v2068_v53, %v1706_v52  ;;  %v2108_v28 = vld [vmem:[#allocation4 + $0x1d4] sm:$0xf0]  ;;  %v2075_v29 = vld [vmem:[#allocation4 + $0xd4] sm:$0xf] }
  0x4c   :  { %556 = vmatpush.bf16.msrb.mxu2 %v1407_v58  ;;  %v2050_v58 = vld [vmem:[#allocation4 + $0x4] sm:$0xf0]  ;;  %v1660_v37 = vld [vmem:[#allocation4 + $0x38] sm:$0xf0]  ;;  %v1858_v38 = vld [vmem:[#allocation4 + $0x1c0] sm:$0xf] }
  0x4d   :  { %569 = vmatpush.bf16.msrb.mxu3 %v1535_v62  ;;  %v1698_v62 = vld [vmem:[#allocation4 + $0x80] sm:$0xf]  ;;  %v1635_v2 = vor.u32 %v2050_v58, %v1634_v57  ;;  %v2106_v39 = vld [vmem:[#allocation4 + $0x1c4] sm:$0xf0]  ;;  %v1652_v47 = vld [vmem:[#allocation4 + $0x28] sm:$0xf0] }
  0x4e   :  { %531 = vmatpush.bf16.msrb.mxu0 %v1387_v5  ;;  %v1699_v4 = vor.u32 %v2066_v63, %v1698_v62  ;;  %v2061_v5 = vld [vmem:[#allocation4 + $0x64] sm:$0xf]  ;;  %v1778_v43 = vld [vmem:[#allocation4 + $0x120] sm:$0xf]  ;;  %v2086_v44 = vld [vmem:[#allocation4 + $0x124] sm:$0xf0] }
  0x4f   :  { %544 = vmatpush.bf16.msrb.mxu1 %v1515_v8  ;;  %v1687_v8 = vor.u32 %v2061_v5, %v1684_v6  ;;  %v1779_v46 = vor.u32 %v2086_v44, %v1778_v43  ;;  %v1850_v49 = vld [vmem:[#allocation4 + $0x1b0] sm:$0xf]  ;;  %v2104_v50 = vld [vmem:[#allocation4 + $0x1b4] sm:$0xf0]  ;;  %v1724_v53 = vld [vmem:[#allocation4 + $0xb8] sm:$0xf0] }
  0x50   :  { %557 = vmatpush.bf16.msrb.mxu2 %v1391_v9  ;;  %v1802_v9 = vld [vmem:[#allocation4 + $0x150] sm:$0xf]  ;;  %v1851_v52 = vor.u32 %v2104_v50, %v1850_v49  ;;  %v2084_v58 = vld [vmem:[#allocation4 + $0x114] sm:$0xf0]  ;;  %v2051_v59 = vld [vmem:[#allocation4 + $0x14] sm:$0xf] }
  0x51   :  { %570 = vmatpush.bf16.msrb.mxu3 %v1519_v10  ;;  %532 = vmatmul.bf16.vlgmr.msrb.gmra.mxu0 %v2300_v55  ;;  %v2092_v10 = vld [vmem:[#allocation4 + $0x154] sm:$0xf0]  ;;  %v1770_v57 = vld [vmem:[#allocation4 + $0x110] sm:$0xf]  ;;  %v1644_v61 = vld [vmem:[#allocation4 + $0x18] sm:$0xf0] }
  0x52   :  { %982 = vmatpush.bf16.msra.mxu0 %v1691_v11  ;;  %545 = vmatmul.bf16.vlgmr.msrb.gmra.mxu1 %v2302_v56  ;;  %v2059_v11 = vld [vmem:[#allocation4 + $0x54] sm:$0xf]  ;;  %v1803_v12 = vor.u32 %v2092_v10, %v1802_v9  ;;  %v1842_v62 = vld [vmem:[#allocation4 + $0x1a0] sm:$0xf]  ;;  %v2102_v63 = vld [vmem:[#allocation4 + $0x1a4] sm:$0xf0]  ;;  %v1647_v0 = vor.u32 %v2051_v59, %v1644_v61 }
  0x53   :  { %995 = vmatpush.bf16.msra.mxu1 %v1755_v16  ;;  %558 = vmatmul.bf16.vlgmr.msrb.gmra.mxu2 %v2300_v55  ;;  %v1667_v55 = vor.u32 %v2058_v34, %v1666_v33  ;;  %v1679_v14 = vor.u32 %v2059_v11, %v1676_v13  ;;  %v2110_v16 = vld [vmem:[#allocation4 + $0x1e4] sm:$0xf0]  ;;  %v1786_v33 = vld [vmem:[#allocation4 + $0x130] sm:$0xf]  ;;  %v2088_v34 = vld [vmem:[#allocation4 + $0x134] sm:$0xf0]  ;;  %v1843_v1 = vor.u32 %v2102_v63, %v1842_v62 }
  0x54   :  { %571 = vmatmul.bf16.vlgmr.msrb.gmra.mxu3 %v2302_v56  ;;  %1008 = vmatpush.bf16.msra.mxu2 %v1819_v19  ;;  %v1722_v56 = vld [vmem:[#allocation4 + $0xb0] sm:$0xf]  ;;  %v1875_v18 = vor.u32 %v2110_v16, %v1874_v15  ;;  %v1748_v19 = vld [vmem:[#allocation4 + $0xe8] sm:$0xf0]  ;;  %v1787_v36 = vor.u32 %v2088_v34, %v1786_v33  ;;  %v2082_v6 = vld [vmem:[#allocation4 + $0x104] sm:$0xf0] }
  0x55   :  { %1021 = vmatpush.bf16.msra.mxu3 %v1883_v31  ;;  %v1723_v45 = vor.u32 %v2072_v41, %v1722_v56  ;;  %v1740_v31 = vld [vmem:[#allocation4 + $0xd8] sm:$0xf0]  ;;  %v1859_v56 = vor.u32 %v2106_v39, %v1858_v38  ;;  %v1732_v41 = vld [vmem:[#allocation4 + $0xc8] sm:$0xf0]  ;;  %v2095_v11 = vld [vmem:[#allocation4 + $0x174] sm:$0xf] }
  0x56   :  { %983 = vmatpush.bf16.msra.mxu0 %v1683_v20  ;;  %v1751_v20 = vor.u32 %v2077_v17, %v1748_v19  ;;  %v1834_v13 = vld [vmem:[#allocation4 + $0x190] sm:$0xf]  ;;  %v2100_v15 = vld [vmem:[#allocation4 + $0x194] sm:$0xf0]  ;;  %v2067_v16 = vld [vmem:[#allocation4 + $0x94] sm:$0xf] }
  0x57   :  { %996 = vmatpush.bf16.msra.mxu1 %v1747_v25  ;;  %v1668_v25 = vld [vmem:[#allocation4 + $0x48] sm:$0xf0]  ;;  %v1708_v17 = vld [vmem:[#allocation4 + $0x98] sm:$0xf0]  ;;  %v1826_v22 = vld [vmem:[#allocation4 + $0x180] sm:$0xf] }
  0x58   :  { %1009 = vmatpush.bf16.msra.mxu2 %v1811_v30  ;;  %v1671_v26 = vor.u32 %v2057_v23, %v1668_v25  ;;  %v1867_v30 = vor.u32 %v2108_v28, %v1866_v27  ;;  %v1711_v19 = vor.u32 %v2067_v16, %v1708_v17  ;;  %v1812_v21 = vld [vmem:[#allocation4 + $0x168] sm:$0xf0]  ;;  %v2065_v25 = vld [vmem:[#allocation4 + $0x84] sm:$0xf]  ;;  %v1804_v33 = vld [vmem:[#allocation4 + $0x158] sm:$0xf0] }
  0x59   :  { %1022 = vmatpush.bf16.msra.mxu3 %v1875_v18  ;;  %v1835_v18 = vor.u32 %v2100_v15, %v1834_v13  ;;  %v2089_v39 = vld [vmem:[#allocation4 + $0x144] sm:$0xf]  ;;  %v1868_v43 = vld [vmem:[#allocation4 + $0x1d8] sm:$0xf0]  ;;  %v1780_v62 = vld [vmem:[#allocation4 + $0x128] sm:$0xf0] }
  0x5a   :  { %984 = vmatpush.bf16.msra.mxu0 %v1675_v32  ;;  %v1743_v32 = vor.u32 %v2075_v29, %v1740_v31  ;;  %v2111_v29 = vld [vmem:[#allocation4 + $0x1f4] sm:$0xf]  ;;  %v2085_v61 = vld [vmem:[#allocation4 + $0x124] sm:$0xf]  ;;  %vm1345_vm8 = vcmask 58368   ;;  %vm1368_vm12 = vcmask 1024  }
  0x5b   :  { %997 = vmatpush.bf16.msra.mxu1 %v1739_v35  ;;  %v2055_v35 = vld [vmem:[#allocation4 + $0x34] sm:$0xf]  ;;  %v1783_v63 = vor.u32 %v2085_v61, %v1780_v62  ;;  %v656_v61 = vld [vmem:[%s2357_s6] sm:$0x3]  ;;  %v2121_v62 = vld [vmem:[#allocation6 + $0x40] sm:$0xff] }
  0x5c   :  { %1010 = vmatpush.bf16.msra.mxu2 %v1803_v12  ;;  %v1820_v12 = vld [vmem:[#allocation4 + $0x178] sm:$0xf0]  ;;  %v2099_v17 = vld [vmem:[#allocation4 + $0x194] sm:$0xf] }
  0x5d   :  { %1023 = vmatpush.bf16.msra.mxu3 %v1867_v30  ;;  %v1884_v30 = vld [vmem:[#allocation4 + $0x1f8] sm:$0xf0] }
  0x5e   :  { %985 = vmatpush.bf16.msra.mxu0 %v1667_v55  ;;  %v1663_v55 = vor.u32 %v2055_v35, %v1660_v37  ;;  %v1887_v31 = vor.u32 %v2111_v29, %v1884_v30  ;;  %v2109_v35 = vld [vmem:[#allocation4 + $0x1e4] sm:$0xf] }
  0x5f   :  { %998 = vmatpush.bf16.msra.mxu1 %v1731_v40  ;;  %v2073_v40 = vld [vmem:[#allocation4 + $0xc4] sm:$0xf] }
  0x60   :  { %1011 = vmatpush.bf16.msra.mxu2 %v1795_v24  ;;  %v2098_v24 = vld [vmem:[#allocation4 + $0x184] sm:$0xf0] }
  0x61   :  { %1024 = vmatpush.bf16.msra.mxu3 %v1859_v56  ;;  %v1827_v27 = vor.u32 %v2098_v24, %v1826_v22 }
  0x62   :  { %986 = vmatpush.bf16.msra.mxu0 %v1659_v42  ;;  %v1735_v42 = vor.u32 %v2073_v40, %v1732_v41  ;;  %v1796_v40 = vld [vmem:[#allocation4 + $0x148] sm:$0xf0] }
  0x63   :  { %999 = vmatpush.bf16.msra.mxu1 %v1723_v45  ;;  %v2053_v45 = vld [vmem:[#allocation4 + $0x24] sm:$0xf]  ;;  %v1799_v41 = vor.u32 %v2089_v39, %v1796_v40  ;;  %v2119_v39 = vld [vmem:[#allocation6 + $0x30] sm:$0xff]  ;;  %v2118_v40 = vld [vmem:[#allocation6 + $0x28] sm:$0xff] }
  0x64   :  { %1012 = vmatpush.bf16.msra.mxu2 %v1787_v36  ;;  %v1876_v36 = vld [vmem:[#allocation4 + $0x1e8] sm:$0xf0] }
  0x65   :  { %1025 = vmatpush.bf16.msra.mxu3 %v1851_v52  ;;  %v2105_v52 = vld [vmem:[#allocation4 + $0x1c4] sm:$0xf] }
  0x66   :  { %987 = vmatpush.bf16.msra.mxu0 %v1651_v48  ;;  %v1655_v48 = vor.u32 %v2053_v45, %v1652_v47  ;;  %v1788_v47 = vld [vmem:[#allocation4 + $0x138] sm:$0xf0] }
  0x67   :  { %1000 = vmatpush.bf16.msra.mxu1 %v1715_v51  ;;  %v2071_v51 = vld [vmem:[#allocation4 + $0xb4] sm:$0xf] }
  0x68   :  { %1013 = vmatpush.bf16.msra.mxu2 %v1779_v46  ;;  %v2087_v46 = vld [vmem:[#allocation4 + $0x134] sm:$0xf] }
  0x69   :  { %1026 = vmatpush.bf16.msra.mxu3 %v1843_v1  ;;  %v1791_v49 = vor.u32 %v2087_v46, %v1788_v47  ;;  %v2103_v1 = vld [vmem:[#allocation4 + $0x1b4] sm:$0xf] }
  0x6a   :  { %988 = vmatpush.bf16.msra.mxu0 %v1643_v54  ;;  %v1727_v54 = vor.u32 %v2071_v51, %v1724_v53  ;;  %v1860_v53 = vld [vmem:[#allocation4 + $0x1c8] sm:$0xf0] }
  0x6b   :  { %1001 = vmatpush.bf16.msra.mxu1 %v1707_v60  ;;  %v1771_v60 = vor.u32 %v2084_v58, %v1770_v57  ;;  %v1863_v58 = vor.u32 %v2105_v52, %v1860_v53 }
  0x6d   :  { %1014 = vmatpush.bf16.msra.mxu2 %v1771_v60  ;;  %1027 = vmatpush.bf16.msra.mxu3 %v1835_v18  ;;  %v1836_v18 = vld [vmem:[#allocation4 + $0x198] sm:$0xf0] }
  0x6e   :  { %989 = vmatpush.bf16.msra.mxu0 %v1635_v2  ;;  %v2069_v2 = vld [vmem:[#allocation4 + $0xa4] sm:$0xf] }
  0x6f   :  { %1002 = vmatpush.bf16.msra.mxu1 %v1699_v4  ;;  %v1762_v4 = vld [vmem:[#allocation4 + $0x100] sm:$0xf] }
  0x70   :  { %v1763_v9 = vor.u32 %v2082_v6, %v1762_v4  ;;  %v1772_v6 = vld [vmem:[#allocation4 + $0x118] sm:$0xf0] }
  0x71   :  { %1028 = vmatpush.bf16.msra.mxu3 %v1827_v27 }
  0x72   :  { %1034 = vmatpush.bf16.msrb.mxu0 %v1695_v3  ;;  %v1716_v3 = vld [vmem:[#allocation4 + $0xa8] sm:$0xf0]  ;;  %1015 = vmatpush.bf16.msra.mxu2 %v1763_v9 }
  0x73   :  { %1047 = vmatpush.bf16.msrb.mxu1 %v1759_v7  ;;  %v1719_v5 = vor.u32 %v2069_v2, %v1716_v3  ;;  %v2049_v7 = vld [vmem:[#allocation4 + $0x4] sm:$0xf]  ;;  %v1852_v2 = vld [vmem:[#allocation4 + $0x1b8] sm:$0xf0] }
  0x74   :  { %v1855_v4 = vor.u32 %v2103_v1, %v1852_v2  ;;  %v2136_v1 = vld [vmem:[%s2355_s4 + $0x38] sm:$0xff] }
  0x75   :  { %1073 = vmatpush.bf16.msrb.mxu3 %v1887_v31 }
  0x76   :  { %1035 = vmatpush.bf16.msrb.mxu0 %v1687_v8  ;;  %v1636_v8 = vld [vmem:[#allocation4 + $0x8] sm:$0xf0] }
  0x77   :  { %1048 = vmatpush.bf16.msrb.mxu1 %v1751_v20  ;;  %v1639_v10 = vor.u32 %v2049_v7, %v1636_v8  ;;  %v2093_v20 = vld [vmem:[#allocation4 + $0x164] sm:$0xf] }
  0x78   :  { %v1815_v23 = vor.u32 %v2093_v20, %v1812_v21  ;;  %v2101_v7 = vld [vmem:[#allocation4 + $0x1a4] sm:$0xf]  ;;  %v1828_v21 = vld [vmem:[#allocation4 + $0x188] sm:$0xf0] }
  0x79   :  { %v2097_v20 = vld [vmem:[#allocation4 + $0x184] sm:$0xf] }
  0x7a   :  { %1036 = vmatpush.bf16.msrb.mxu0 %v1679_v14  ;;  %v1823_v14 = vor.u32 %v2095_v11, %v1820_v12  ;;  %v2081_v11 = vld [vmem:[#allocation4 + $0x104] sm:$0xf]  ;;  %v1764_v12 = vld [vmem:[#allocation4 + $0x108] sm:$0xf0]  ;;  %v1831_v22 = vor.u32 %v2097_v20, %v1828_v21 }
  0x7b   :  { %1049 = vmatpush.bf16.msrb.mxu1 %v1743_v32  ;;  %v2091_v32 = vld [vmem:[#allocation4 + $0x154] sm:$0xf]  ;;  %v1767_v16 = vor.u32 %v2081_v11, %v1764_v12 }
  0x7c   :  { %1060 = vmatpush.bf16.msrb.mxu2 %v1823_v14  ;;  %v1807_v34 = vor.u32 %v2091_v32, %v1804_v33 }
  0x7e   :  { %1037 = vmatpush.bf16.msrb.mxu0 %v1671_v26  ;;  %v1700_v26 = vld [vmem:[#allocation4 + $0x88] sm:$0xf0] }
  0x7f   :  { %1050 = vmatpush.bf16.msrb.mxu1 %v1735_v42  ;;  %v1703_v28 = vor.u32 %v2065_v25, %v1700_v26  ;;  %v2107_v42 = vld [vmem:[#allocation4 + $0x1d4] sm:$0xf] }
  0x80   :  { %1061 = vmatpush.bf16.msrb.mxu2 %v1815_v23  ;;  %v1871_v45 = vor.u32 %v2107_v42, %v1868_v43  ;;  %v2128_v42 = vld [vmem:[#allocation6 + $0x78] sm:$0xff] }
  0x82   :  { %1038 = vmatpush.bf16.msrb.mxu0 %v1663_v55  ;;  %v1879_v55 = vor.u32 %v2109_v35, %v1876_v36 }
  0x83   :  { %1051 = vmatpush.bf16.msrb.mxu1 %v1727_v54 }
  0x84   :  { %1062 = vmatpush.bf16.msrb.mxu2 %v1807_v34  ;;  %1074 = vmatpush.bf16.msrb.mxu3 %v1879_v55 }
  0x86   :  { %1039 = vmatpush.bf16.msrb.mxu0 %v1655_v48 }
  0x87   :  { %1052 = vmatpush.bf16.msrb.mxu1 %v1719_v5  ;;  %v2083_v5 = vld [vmem:[#allocation4 + $0x114] sm:$0xf] }
  0x88   :  { %1063 = vmatpush.bf16.msrb.mxu2 %v1799_v41  ;;  %1075 = vmatpush.bf16.msrb.mxu3 %v1871_v45  ;;  %v1775_v9 = vor.u32 %v2083_v5, %v1772_v6  ;;  %v2116_v41 = vld [vmem:[#allocation6 + $0x18] sm:$0xff]  ;;  %v2127_v45 = vld [vmem:[#allocation6 + $0x70] sm:$0xff] }
  0x8a   :  { %1040 = vmatpush.bf16.msrb.mxu0 %v1647_v0 }
  0x8b   :  { %1053 = vmatpush.bf16.msrb.mxu1 %v1711_v19  ;;  %v1839_v19 = vor.u32 %v2099_v17, %v1836_v18 }
  0x8c   :  { %1064 = vmatpush.bf16.msrb.mxu2 %v1791_v49  ;;  %1076 = vmatpush.bf16.msrb.mxu3 %v1863_v58  ;;  %v2126_v49 = vld [vmem:[#allocation6 + $0x68] sm:$0xff] }
  0x8e   :  { %1041 = vmatpush.bf16.msrb.mxu0 %v1639_v10  ;;  %v1844_v10 = vld [vmem:[#allocation4 + $0x1a8] sm:$0xf0] }
  0x8f   :  { %1054 = vmatpush.bf16.msrb.mxu1 %v1703_v28  ;;  %v1847_v14 = vor.u32 %v2101_v7, %v1844_v10 }
  0x90   :  { %1065 = vmatpush.bf16.msrb.mxu2 %v1783_v63  ;;  %1077 = vmatpush.bf16.msrb.mxu3 %v1855_v4  ;;  %v658_v63 = vperm.slane %v656_v61, 0  ;;  %v2135_v4 = vld [vmem:[%s2355_s4 + $0x30] sm:$0xff] }
  0x94   :  { %1066 = vmatpush.bf16.msrb.mxu2 %v1775_v9  ;;  %1078 = vmatpush.bf16.msrb.mxu3 %v1847_v14 }
  0x98   :  { %1067 = vmatpush.bf16.msrb.mxu2 %v1767_v16  ;;  %1079 = vmatpush.bf16.msrb.mxu3 %v1839_v19 }
  0x9c   :  { %1080 = vmatpush.bf16.msrb.mxu3 %v1831_v22 }
  0xae   :  { %v481_v37 = vpop.f32.mrf.mxu0 }
  0xaf   :  { %v494_v38 = vpop.f32.mrf.mxu1 }
  0xb0   :  { %v495_v56 = vadd.f32 %v494_v38, %v481_v37  ;;  %v2120_v38 = vld [vmem:[#allocation6 + $0x38] sm:$0xff] }
  0xb2   :  { %vm576_vm0 = vcmp.gt.f32.partialorder %v495_v56, 0.0  ;;  %v580_v44 = vmul.f32 0.2, %v495_v56 }
  0xb4   :  { %v584_v48 = vsel %vm576_vm0, %v495_v56, %v580_v44  ;;  %v2117_v56 = vld [vmem:[#allocation6 + $0x20] sm:$0xff]  ;;  %v2115_v44 = vld [vmem:[#allocation6 + $0x10] sm:$0xff] }
  0xb5   :  { %v588_v50 = vpack.c.bf16 %v584_v48, %v584_v48  ;;  %v2114_v48 = vld [vmem:[#allocation6 + $0x8] sm:$0xff] }
  0xb6   :  { %v507_v51 = vpop.f32.mrf.mxu2  ;;  %v483_v57 = vpop.f32.mrf.mxu0 }
  0xb7   :  { %v520_v54 = vpop.f32.mrf.mxu3  ;;  %990 = vmatmul.bf16.vlgmr.msra.gmra.mxu0 %v588_v50  ;;  %v496_v60 = vpop.f32.mrf.mxu1  ;;  %v2123_v57 = vld [vmem:[#allocation6 + $0x50] sm:$0xff] }
  0xb8   :  { %v521_v59 = vadd.f32 %v520_v54, %v507_v51  ;;  %1226 = vmatpush.bf16.msra.mxu0 %v2120_v38  ;;  %v2125_v51 = vld [vmem:[#allocation6 + $0x60] sm:$0xff]  ;;  %v2124_v54 = vld [vmem:[#allocation6 + $0x58] sm:$0xff]  ;;  %v2122_v60 = vld [vmem:[#allocation6 + $0x48] sm:$0xff] }
  0xba   :  { %vm577_vm1 = vcmp.gt.f32.partialorder %v521_v59, 0.0  ;;  %v581_v0 = vmul.f32 0.2, %v521_v59 }
  0xbc   :  { %v585_v3 = vsel %vm577_vm1, %v521_v59, %v581_v0  ;;  %1227 = vmatpush.bf16.msra.mxu0 %v2119_v39 }
  0xbd   :  { %v589_v8 = vpack.c.bf16 %v585_v3, %v585_v3 }
  0xbe   :  { %v509_v13 = vpop.f32.mrf.mxu2 }
  0xbf   :  { %1003 = vmatmul.bf16.vlgmr.msra.gmra.mxu1 %v589_v8  ;;  %v522_v15 = vpop.f32.mrf.mxu3  ;;  %v659_v13 = vperm.slane %v656_v61, 1 }
  0xc0   :  { %1228 = vmatpush.bf16.msra.mxu0 %v2118_v40  ;;  %1239 = vmatpush.bf16.msra.mxu1 %v2128_v42 }
  0xc4   :  { %1229 = vmatpush.bf16.msra.mxu0 %v2117_v56  ;;  %1240 = vmatpush.bf16.msra.mxu1 %v2127_v45  ;;  %v2147_v56 = vld [vmem:[%s2359_s8] ss:$0 sm:$0xff] }
  0xc7   :  { %1042 = vmatmul.bf16.vlgmr.msrb.gmra.mxu0 %v588_v50  ;;  %v2113_v50 = vld [vmem:[#allocation6] sm:$0xff] }
  0xc8   :  { %1230 = vmatpush.bf16.msra.mxu0 %v2116_v41  ;;  %1241 = vmatpush.bf16.msra.mxu1 %v2126_v49 }
  0xcc   :  { %1231 = vmatpush.bf16.msra.mxu0 %v2115_v44  ;;  %1242 = vmatpush.bf16.msra.mxu1 %v2125_v51 }
  0xce   :  { %v533_v23 = vpop.f32.mrf.mxu0 }
  0xcf   :  { %v546_v24 = vpop.f32.mrf.mxu1  ;;  %1055 = vmatmul.bf16.vlgmr.msrb.gmra.mxu1 %v589_v8 }
  0xd0   :  { %v547_v25 = vadd.f32 %v546_v24, %v533_v23  ;;  %1232 = vmatpush.bf16.msra.mxu0 %v2114_v48  ;;  %1243 = vmatpush.bf16.msra.mxu1 %v2124_v54 }
  0xd2   :  { %vm578_vm2 = vcmp.gt.f32.partialorder %v547_v25, 0.0  ;;  %v582_v26 = vmul.f32 0.2, %v547_v25 }
  0xd4   :  { %v586_v27 = vsel %vm578_vm2, %v547_v25, %v582_v26  ;;  %1233 = vmatpush.bf16.msra.mxu0 %v2113_v50  ;;  %1244 = vmatpush.bf16.msra.mxu1 %v2123_v57  ;;  %v2134_v26 = vld [vmem:[%s2355_s4 + $0x28] sm:$0xff] }
  0xd5   :  { %v590_v28 = vpack.c.bf16 %v586_v27, %v586_v27  ;;  %v2133_v27 = vld [vmem:[%s2355_s4 + $0x20] sm:$0xff] }
  0xd6   :  { %v559_v29 = vpop.f32.mrf.mxu2  ;;  %v535_v31 = vpop.f32.mrf.mxu0 }
  0xd7   :  { %v572_v30 = vpop.f32.mrf.mxu3  ;;  %v548_v33 = vpop.f32.mrf.mxu1  ;;  %1016 = vmatmul.bf16.vlgmr.msra.gmra.mxu2 %v590_v28  ;;  %v2129_v31 = vld [vmem:[%s2355_s4] sm:$0xff] }
  0xd8   :  { %v573_v32 = vadd.f32 %v572_v30, %v559_v29  ;;  %1245 = vmatpush.bf16.msra.mxu1 %v2122_v60  ;;  %1324 = vmatpush.bf16.msra.mxu2 %v2136_v1  ;;  %v2131_v29 = vld [vmem:[%s2355_s4 + $0x10] sm:$0xff]  ;;  %v2130_v30 = vld [vmem:[%s2355_s4 + $0x8] sm:$0xff] }
  0xda   :  { %vm579_vm3 = vcmp.gt.f32.partialorder %v573_v32, 0.0  ;;  %v583_v34 = vmul.f32 0.2, %v573_v32 }
  0xdc   :  { %v587_v35 = vsel %vm579_vm3, %v573_v32, %v583_v34  ;;  %1246 = vmatpush.bf16.msra.mxu1 %v2121_v62  ;;  %1325 = vmatpush.bf16.msra.mxu2 %v2135_v4  ;;  %v2146_v34 = vld [vmem:[%s2358_s7] ss:$0 sm:$0xff] }
  0xdd   :  { %v591_v36 = vpack.c.bf16 %v587_v35, %v587_v35 }
  0xde   :  { %v561_v37 = vpop.f32.mrf.mxu2 }
  0xdf   :  { %v574_v55 = vpop.f32.mrf.mxu3  ;;  %1029 = vmatmul.bf16.vlgmr.msra.gmra.mxu3 %v591_v36 }
  0xe0   :  { %1326 = vmatpush.bf16.msra.mxu2 %v2134_v26 }
  0xe4   :  { %1327 = vmatpush.bf16.msra.mxu2 %v2133_v27 }
  0xe7   :  { %1068 = vmatmul.bf16.vlgmr.msrb.gmra.mxu2 %v590_v28  ;;  %v2132_v28 = vld [vmem:[%s2355_s4 + $0x18] sm:$0xff] }
  0xe8   :  { %1328 = vmatpush.bf16.msra.mxu2 %v2132_v28 }
  0xec   :  { %1329 = vmatpush.bf16.msra.mxu2 %v2131_v29 }
  0xef   :  { %1081 = vmatmul.bf16.vlgmr.msrb.gmra.mxu3 %v591_v36 }
  0xf0   :  { %1330 = vmatpush.bf16.msra.mxu2 %v2130_v30 }
  0xf4   :  { %1331 = vmatpush.bf16.msra.mxu2 %v2129_v31 }
 0x134   :  { %v991_v43 = vpop.f32.mrf.mxu0 }
 0x135   :  { %v992_v2 = vadd.f32 %v991_v43, %v658_v63  ;;  %v2148_v43 = vld [vmem:[%s2356_s5] ss:$0 sm:$0xff] }
 0x13c   :  { %v1004_v46 = vpop.f32.mrf.mxu1  ;;  %v993_v47 = vpop.f32.mrf.mxu0 }
 0x13d   :  { %v1005_v5 = vadd.f32 %v1004_v46, %v992_v2 }
 0x144   :  { %v1006_v52 = vpop.f32.mrf.mxu1  ;;  %v1043_v53 = vpop.f32.mrf.mxu0 }
 0x145   :  { %v1044_v16 = vadd.f32 %v1043_v53, %v659_v13 }
 0x14c   :  { %v1056_v58 = vpop.f32.mrf.mxu1  ;;  %v1045_v59 = vpop.f32.mrf.mxu0 }
 0x14d   :  { %v1057_v17 = vadd.f32 %v1056_v58, %v1044_v16 }
 0x154   :  { %v1058_v0 = vpop.f32.mrf.mxu1 }
 0x15a   :  { %v1017_v3 = vpop.f32.mrf.mxu2 }
 0x15b   :  { %v1018_v6 = vadd.f32 %v1017_v3, %v1005_v5 }
 0x162   :  { %v1030_v7 = vpop.f32.mrf.mxu3  ;;  %v1019_v9 = vpop.f32.mrf.mxu2 }
 0x163   :  { %v1031_v8 = vadd.f32 %v1030_v7, %v1018_v6 }
 0x165   :  { %vm1086_vm4 = vcmp.gt.f32.partialorder %v1031_v8, 0.0  ;;  %v1088_v10 = vmul.f32 0.2, %v1031_v8 }
 0x167   :  { %v1090_v11 = vsel %vm1086_vm4, %v1031_v8, %v1088_v10 }
 0x168   :  { %v1092_v12 = vpack.c.bf16 %v1090_v11, %v1090_v11 }
 0x16a   :  { %v1032_v14 = vpop.f32.mrf.mxu3  ;;  %1234 = vmatmul.bf16.vlgmr.msra.gmra.mxu0 %v1092_v12  ;;  %v1069_v15 = vpop.f32.mrf.mxu2 }
 0x16b   :  { %v1070_v18 = vadd.f32 %v1069_v15, %v1057_v17 }
 0x172   :  { %v1082_v19 = vpop.f32.mrf.mxu3  ;;  %v1071_v21 = vpop.f32.mrf.mxu2 }
 0x173   :  { %v1083_v20 = vadd.f32 %v1082_v19, %v1070_v18 }
 0x175   :  { %vm1087_vm5 = vcmp.gt.f32.partialorder %v1083_v20, 0.0  ;;  %v1089_v22 = vmul.f32 0.2, %v1083_v20 }
 0x177   :  { %v1091_v23 = vsel %vm1087_vm5, %v1083_v20, %v1089_v22 }
 0x178   :  { %v1093_v24 = vpack.c.bf16 %v1091_v23, %v1091_v23 }
 0x17a   :  { %v1084_v25 = vpop.f32.mrf.mxu3  ;;  %1247 = vmatmul.bf16.vlgmr.msra.gmra.mxu1 %v1093_v24 }
 0x1e7   :  { %v1235_v32 = vpop.f32.mrf.mxu0 }
 0x1e8   :  { %v1236_v35 = vadd.f32 %v2146_v34, %v1235_v32 }
 0x1ef   :  { %v1237_v33 = vpop.f32.mrf.mxu0 }
 0x1f7   :  { %v1248_v36 = vpop.f32.mrf.mxu1 }
 0x1f8   :  { %v1249_v37 = vadd.f32 %v1248_v36, %v1236_v35 }
 0x1fa   :  { %vm1252_vm6 = vcmp.gt.f32.partialorder %v1249_v37, 0.0  ;;  %v1253_v55 = vmul.f32 0.2, %v1249_v37 }
 0x1fc   :  { %v1254_v38 = vsel %vm1252_vm6, %v1249_v37, %v1253_v55 }
 0x1fd   :  { %v1255_v39 = vpack.c.bf16 %v1254_v38, %v1254_v38 }
 0x1ff   :  { %v1250_v40 = vpop.f32.mrf.mxu1  ;;  %1332 = vmatmul.bf16.vlgmr.msra.gmra.mxu2 %v1255_v39 }
 0x282   :  { %v1333_v41 = vpop.f32.mrf.mxu2 }
 0x283   :  { %v1334_v42 = vadd.f32 %v2147_v56, %v1333_v41 }
 0x285   :  { %v1338_v44 = vmul.f32 0.2, %v1334_v42  ;;  %vm1337_vm7 = vcmp.gt.f32.partialorder %v1334_v42, 0.0 }
 0x287   :  { %v1339_v45 = vsel %vm1337_vm7, %v1334_v42, %v1338_v44 }
 0x288   :  { %v1344_v46 = vmul.f32 %v2148_v43, %v1339_v45 }
 0x28a   :  { %v1335_v47 = vpop.f32.mrf.mxu2  ;;  %v1346_v48 = vsel %vm1345_vm8, %v1344_v46, 0.0 }
 0x28b   :  { %1347 = vadd.xlane.f32.xlu0 %v1346_v48 }
 0x2fe   :  { %v1348_v49 = vpop.xlane.xlu0 %1347 }
 0x2ff   :  { %v1984_v50 = vmul.f32 -1.442695, %v1348_v49 }
 0x301   :  { %2149 = vpow2.f32 %v1984_v50 }
 0x307   :  { %v2150_v51 = vpop.eup %2149 }
 0x308   :  { %v1352_v52 = vadd.f32 1.0, %v2150_v51 }
 0x30a   :  { %2151 = vrcp.f32 %v1352_v52  ;;  %v1364_v58 = vand.u32 2147483648, %v1352_v52  ;;  %v1362_v60 = vand.u32 2147483647, %v1352_v52  ;;  %vm1358_vm10 = vweird.f32 %v1352_v52 }
 0x30c   :  { %v1365_v62 = vor.u32 1.1754944e-38, %v1364_v58  ;;  %vm1363_vm13 = vcmp.eq.f32.partialorder %v1362_v60, 8.507059e+37 }
 0x310   :  { %v2152_v53 = vpop.eup %2151 }
 0x311   :  { %v1354_v54 = vmul.f32 %v2152_v53, %v1352_v52  ;;  %vm1359_vm9 = vweird.f32 %v2152_v53 }
 0x312   :  { %vm1360_vm11 = vmor %vm1358_vm10, %vm1359_vm9 }
 0x313   :  { %v1355_v57 = vsub.f32 1.0, %v1354_v54 }
 0x315   :  { %v1356_v59 = vmul.f32 %v2152_v53, %v1355_v57 }
 0x317   :  { %v1357_v61 = vadd.f32 %v2152_v53, %v1356_v59 }
 0x319   :  { %v1361_v63 = vsel %vm1360_vm11, %v2152_v53, %v1357_v61 }
 0x31a   :  { %v1366_v0 = vsel %vm1363_vm13, %v1365_v62, %v1361_v63 }
 0x31b   :  { %1369 = vst.msk [vmem:[%s2360_s9] sm:$0x3] %vm1368_vm12, %v1366_v0 }
 0x31c   :  { %1374 = vsyncpa [#allocation3], 1 }
 0x31d   :  { %1375 = vsyncpa [#allocation5], 1 }

</bundles_post_ra>
